<compile_context>
chip_gen: v5e
topology: v5e:2x2
jax: 0.10.0
libtpu: 0.0.40
codegen_flags: <defaults>
</compile_context>

<pallas_src>
import jax
import jax.numpy as jnp
from jax.experimental import pallas as pl
from jax.experimental.pallas import tpu as pltpu


def _round_up(v: int, m: int) -> int:
    return ((v + m - 1) // m) * m


def _tpu_vmem_bytes() -> int:
    """Per-core VMEM capacity; conservative (v7x-class) fallback."""
    try:
        info = pltpu.get_tpu_info()
        cap = int(getattr(info, "vmem_capacity_bytes", 0) or 0)
        if cap > 0:
            return cap
    except Exception:
        pass
    return 64 * 1024 * 1024


def _choose_block_l(L: int, H: int, x_itemsize: int, KR: int,
                    w_itemsize: int, B: int, vmem_cap: int) -> int:
    """Pick the L-tile size by bytes: ~4 MiB x tile, within a VMEM budget."""
    row_bytes = max(H * x_itemsize, 1)
    target_tile_bytes = 4 << 20                      # ~4 MiB keeps DMAs near the HBM roofline
    budget = int(vmem_cap * 0.6)                     # headroom for Mosaic scratch / semaphores
    weight_bytes = 2 * (2 * KR * H * w_itemsize)     # A_sel + B_sel, double-buffered
    avail = max(budget - weight_bytes, 4 * 8 * row_bytes)
    by_budget = max(avail // (4 * row_bytes), 8)     # 4 live x-size copies: in+out, double-buffered
    tl = min(max(target_tile_bytes // row_bytes, 8), by_budget)
    tl = min(tl, _round_up(max(L, 1), 8))            # no point exceeding (padded) L
    # v7x megacore: keep at least 2 independent grid steps when possible.
    n_steps = B * (-(-L // max(tl, 1)))
    if n_steps < 2 and L > 8:
        tl = _round_up(-(-L // 2), 8)
    return max(8, (int(tl) // 8) * 8)


def _moe_lora_kernel(x_ref,    # (1, tL, H)   input tile for batch row b
                     a_ref,    # (1, KR, H)   selected down-projections (lane-dense)
                     b_ref,    # (1, KR, H)   selected up-projections   (lane-dense)
                     g_ref,    # (1, 1, KR)   f32 top-k gate, repeated R times / expert
                     o_ref):   # (1, tL, H)   output tile
    xb = x_ref[0]                                                     # (tL, H)
    # Down projection, contracting on H (both operands lane-dense), f32 acc.
    t = jax.lax.dot_general(
        xb, a_ref[0],
        dimension_numbers=(((1,), (1,)), ((), ())),
        preferred_element_type=jnp.float32)                           # (tL, KR)
    # Apply the softmax gate in f32 on the tiny intermediate (free VPU work in
    # this mem-bound regime); avoids re-quantizing gate*B into bf16 weights.
    t = t * g_ref[0]                                                  # broadcast (1, KR)
    t = t.astype(b_ref.dtype)
    # Up projection, f32 accumulate.
    y = jnp.dot(t, b_ref[0], preferred_element_type=jnp.float32)      # (tL, H)
    # Residual add in f32, single cast to the output dtype.
    o_ref[0] = (xb.astype(jnp.float32) + y).astype(o_ref.dtype)


def moe_adapter_forward(x, router_w, a_w, b_w, top_k,
                        block_l=None, donate_x=False):
    """x: (B, L, H); router_w: (E, H); a_w: (E, H, R); b_w: (E, R, H)."""
    B, L, H = x.shape
    E = router_w.shape[0]
    R = a_w.shape[-1]
    K = min(top_k, E)
    KR = K * R

    # ---- router + top-k gating (tiny O(B*E) glue, fp32 like the torch router) ----
    cls = x[:, 0, :]
    gate_logits = jnp.einsum('bh,eh->be', cls, router_w,
                             preferred_element_type=jnp.float32)      # (B, E) f32
    topk_val, topk_idx = jax.lax.top_k(gate_logits, K)                # (B, K)
    # softmax over the -inf-masked logits == softmax restricted to the top-k set
    gate_topk = jax.nn.softmax(topk_val, axis=-1)                     # (B, K) f32

    # ---- gather only the selected experts (lane-dense: last dim = H) ----
    a_sel = jnp.transpose(a_w[topk_idx], (0, 1, 3, 2)).reshape(B, KR, H)   # (B, KR, H)
    b_sel = b_w[topk_idx].reshape(B, KR, H)                                # (B, KR, H)
    gate_kr = jnp.repeat(gate_topk, R, axis=-1).astype(jnp.float32)
    gate_kr = gate_kr.reshape(B, 1, KR)

    # ---- optional lane padding: only when cheap (<= 12.5% extra bytes) ----
    Hk = H
    H128 = _round_up(H, 128)
    if H128 != H and (H128 - H) * 8 <= H:
        dh = H128 - H
        x = jnp.pad(x, ((0, 0), (0, 0), (0, dh)))
        a_sel = jnp.pad(a_sel, ((0, 0), (0, 0), (0, dh)))
        b_sel = jnp.pad(b_sel, ((0, 0), (0, 0), (0, dh)))
        Hk = H128

    # ---- byte-based, VMEM-budgeted L tile; pad L to a tile multiple ----
    x_itemsize = x.dtype.itemsize
    w_itemsize = b_sel.dtype.itemsize
    vmem_cap = _tpu_vmem_bytes()
    if block_l is None:
        tL = _choose_block_l(L, Hk, x_itemsize, KR, w_itemsize, B, vmem_cap)
    else:
        tL = max(8, _round_up(int(block_l), 8))
    tL = min(tL, _round_up(L, 8))
    Lp = _round_up(L, tL)
    if Lp != L:
        x = jnp.pad(x, ((0, 0), (0, Lp - L), (0, 0)))

    # ---- explicit VMEM limit (v5e default 16 MiB would clamp; v7x cap ~64 MiB) ----
    x_tile_bytes = tL * Hk * x_itemsize
    weight_bytes = 2 * (2 * KR * Hk * w_itemsize)
    vmem_needed = 4 * x_tile_bytes + weight_bytes + 2 * KR * 4
    vmem_limit = int(min(max(2 * vmem_needed, 32 << 20), int(vmem_cap * 0.85)))

    cost = pl.CostEstimate(
        flops=4 * B * Lp * Hk * KR,
        transcendentals=0,
        bytes_accessed=(2 * B * Lp * Hk * x_itemsize
                        + B * 2 * KR * Hk * w_itemsize + B * KR * 4),
    )

    out = pl.pallas_call(
        _moe_lora_kernel,
        out_shape=jax.ShapeDtypeStruct((B, Lp, Hk), x.dtype),
        grid=(B, Lp // tL),
        in_specs=[
            pl.BlockSpec((1, tL, Hk), lambda b, l: (b, l, 0)),   # x tile
            pl.BlockSpec((1, KR, Hk), lambda b, l: (b, 0, 0)),   # A_sel (resident over l)
            pl.BlockSpec((1, KR, Hk), lambda b, l: (b, 0, 0)),   # B_sel (resident over l)
            pl.BlockSpec((1, 1, KR), lambda b, l: (b, 0, 0)),    # gate (tiny, f32)
        ],
        out_specs=pl.BlockSpec((1, tL, Hk), lambda b, l: (b, l, 0)),
        compiler_params=pltpu.CompilerParams(
            dimension_semantics=("parallel", "parallel"),
            vmem_limit_bytes=vmem_limit),
        cost_estimate=cost,
        input_output_aliases=({0: 0} if donate_x else {}),
    )(x, a_sel, b_sel, gate_kr)

    if Lp != L or Hk != H:
        out = out[:, :L, :H]
    return out


def moe_adapter_reference(x, router_w, a_w, b_w, top_k):
    """Pure-JAX reference mirroring the PyTorch forward (computes all experts)."""
    B, L, H = x.shape
    E = router_w.shape[0]
    cls = x[:, 0, :]
    gate_logits = jnp.einsum('bh,eh->be', cls, router_w,
                             preferred_element_type=jnp.float32)
    if top_k < E:
        topk_val, topk_idx = jax.lax.top_k(gate_logits, top_k)
        mask = jnp.full_like(gate_logits, -jnp.inf)
        mask = mask.at[jnp.arange(B)[:, None], topk_idx].set(topk_val)
        gate = jax.nn.softmax(mask, axis=-1)
    else:
        gate = jax.nn.softmax(gate_logits, axis=-1)
    experts_out = jnp.einsum('blh,ehr,erk->belk', x, a_w, b_w)   # (B, E, L, H)
    weighted = (gate[:, :, None, None] * experts_out).sum(axis=1)
    return x + weighted.astype(x.dtype)


if __name__ == "__main__":
    # Small shapes consistent with the module's forward: x is (B, L, H).
    B, L, H = 2, 8, 32
    num_experts, lora_rank, top_k = 4, 8, 1

    key = jax.random.PRNGKey(0)
    kx, kr, ka, kb = jax.random.split(key, 4)

    x = jax.random.normal(kx, (B, L, H), dtype=jnp.float32)
    router_w = jax.random.normal(kr, (num_experts, H), dtype=jnp.float32) * 0.02
    a_w = jax.random.normal(ka, (num_experts, H, lora_rank), dtype=jnp.float32) * 0.1
    b_w = jax.random.normal(kb, (num_experts, lora_rank, H), dtype=jnp.float32) * 0.1

    out = moe_adapter_forward(x, router_w, a_w, b_w, top_k)
    out = jax.block_until_ready(out)

    ref = moe_adapter_reference(x, router_w, a_w, b_w, top_k)
    assert out.shape == (B, L, H)
    assert jnp.allclose(out, ref, atol=1e-4, rtol=1e-4), "mismatch vs reference"

    print("KERNEL_OK")
</pallas_src>

<mosaic_0001>
module attributes {stable_mosaic.version = 11 : i64} {
  func.func @_moe_lora_kernel(%arg0: i32, %arg1: i32, %arg2: memref<1x8x32xf32, #tpu.memory_space<vmem>>, %arg3: memref<1x8x32xf32, #tpu.memory_space<vmem>>, %arg4: memref<1x8x32xf32, #tpu.memory_space<vmem>>, %arg5: memref<1x1x8xf32, #tpu.memory_space<vmem>>, %arg6: memref<1x8x32xf32, #tpu.memory_space<vmem>>) attributes {dimension_semantics = [#tpu.dimension_semantics<parallel>, #tpu.dimension_semantics<parallel>], iteration_bounds = array<i64: 2, 1>, scalar_prefetch = 0 : i64, scratch_operands = 0 : i64, tpu.core_type = #tpu.core_type<tc>, window_params = [{transform_indices = @transform_0, window_bounds = array<i64: 1, 8, 32>}, {transform_indices = @transform_1, window_bounds = array<i64: 1, 8, 32>}, {transform_indices = @transform_2, window_bounds = array<i64: 1, 8, 32>}, {transform_indices = @transform_3, window_bounds = array<i64: 1, 1, 8>}, {transform_indices = @transform_4, window_bounds = array<i64: 1, 8, 32>}]} {
    %c0 = arith.constant 0 : index
    %c0_0 = arith.constant 0 : index
    %c0_1 = arith.constant 0 : index
    %0 = vector.load %arg2[%c0, %c0_0, %c0_1] : memref<1x8x32xf32, #tpu.memory_space<vmem>>, vector<1x8x32xf32>
    %1 = vector.shape_cast %0 : vector<1x8x32xf32> to vector<8x32xf32>
    %c0_2 = arith.constant 0 : index
    %c0_3 = arith.constant 0 : index
    %c0_4 = arith.constant 0 : index
    %2 = vector.load %arg3[%c0_2, %c0_3, %c0_4] : memref<1x8x32xf32, #tpu.memory_space<vmem>>, vector<1x8x32xf32>
    %3 = vector.shape_cast %2 : vector<1x8x32xf32> to vector<8x32xf32>
    %cst = arith.constant dense<0.000000e+00> : vector<8x8xf32>
    %4 = tpu.matmul %1, %3, %cst {dimension_numbers = #tpu.dot_dimension_numbers<[1], [1], [0], [0], [0, 0, 1, 0], [], []>} : vector<8x32xf32>, vector<8x32xf32>, vector<8x8xf32> -> vector<8x8xf32>
    %c0_5 = arith.constant 0 : index
    %c0_6 = arith.constant 0 : index
    %c0_7 = arith.constant 0 : index
    %5 = vector.load %arg5[%c0_5, %c0_6, %c0_7] : memref<1x1x8xf32, #tpu.memory_space<vmem>>, vector<1x1x8xf32>
    %6 = vector.shape_cast %5 : vector<1x1x8xf32> to vector<1x8xf32>
    %7 = vector.broadcast %6 : vector<1x8xf32> to vector<8x8xf32>
    %8 = arith.mulf %4, %7 : vector<8x8xf32>
    %c0_8 = arith.constant 0 : index
    %c0_9 = arith.constant 0 : index
    %c0_10 = arith.constant 0 : index
    %9 = vector.load %arg4[%c0_8, %c0_9, %c0_10] : memref<1x8x32xf32, #tpu.memory_space<vmem>>, vector<1x8x32xf32>
    %10 = vector.shape_cast %9 : vector<1x8x32xf32> to vector<8x32xf32>
    %cst_11 = arith.constant dense<0.000000e+00> : vector<8x32xf32>
    %11 = tpu.matmul %8, %10, %cst_11 {dimension_numbers = #tpu.dot_dimension_numbers<[1], [0], [0], [1], [0, 0, 1, 1], [], []>} : vector<8x8xf32>, vector<8x32xf32>, vector<8x32xf32> -> vector<8x32xf32>
    %12 = arith.addf %1, %11 : vector<8x32xf32>
    %c0_12 = arith.constant 0 : index
    %c0_13 = arith.constant 0 : index
    %c0_14 = arith.constant 0 : index
    %13 = vector.load %arg6[%c0_12, %c0_13, %c0_14] : memref<1x8x32xf32, #tpu.memory_space<vmem>>, vector<1x8x32xf32>
    %14 = vector.shape_cast %13 : vector<1x8x32xf32> to vector<8x32xf32>
    %15 = vector.shape_cast %12 : vector<8x32xf32> to vector<1x8x32xf32>
    tpu.vector_store %arg6[%c0_12, %c0_13, %c0_14], %15 {strides = array<i32>} : memref<1x8x32xf32, #tpu.memory_space<vmem>>, vector<1x8x32xf32>,
    return
  }
  func.func @transform_0(%arg0: i32, %arg1: i32) -> (i32, i32, i32) {
    %c0_i32 = arith.constant 0 : i32
    %c0_i32_0 = arith.constant 0 : i32
    return %arg0, %arg1, %c0_i32 : i32, i32, i32
  }
  func.func @transform_1(%arg0: i32, %arg1: i32) -> (i32, i32, i32) {
    %c0_i32 = arith.constant 0 : i32
    %c0_i32_0 = arith.constant 0 : i32
    %c0_i32_1 = arith.constant 0 : i32
    return %arg0, %c0_i32, %c0_i32_0 : i32, i32, i32
  }
  func.func @transform_2(%arg0: i32, %arg1: i32) -> (i32, i32, i32) {
    %c0_i32 = arith.constant 0 : i32
    %c0_i32_0 = arith.constant 0 : i32
    %c0_i32_1 = arith.constant 0 : i32
    return %arg0, %c0_i32, %c0_i32_0 : i32, i32, i32
  }
  func.func @transform_3(%arg0: i32, %arg1: i32) -> (i32, i32, i32) {
    %c0_i32 = arith.constant 0 : i32
    %c0_i32_0 = arith.constant 0 : i32
    %c0_i32_1 = arith.constant 0 : i32
    return %arg0, %c0_i32, %c0_i32_0 : i32, i32, i32
  }
  func.func @transform_4(%arg0: i32, %arg1: i32) -> (i32, i32, i32) {
    %c0_i32 = arith.constant 0 : i32
    %c0_i32_0 = arith.constant 0 : i32
    return %arg0, %arg1, %c0_i32 : i32, i32, i32
  }
}

</mosaic_0001>

<bundles_post_ra>
// kernel: tpu_custom_call.1
= control target key start
LH: loop header
LB: loop body
LE: loop exit
PB: predicated region body
PF: predicated region fallthrough
CT: control target
= control target key end

     0   :  { %s995_s0 = inlined_call_operand.hbm [shape: f32[2,8,32], index: 0, kind: input, shape index: {}]   ;;  %s996_s1 = inlined_call_operand.hbm [shape: f32[2,8,32], index: 1, kind: input, shape index: {}]   ;;  %s997_s2 = inlined_call_operand.hbm [shape: f32[2,8,32], index: 2, kind: input, shape index: {}]   ;;  %s998_s3 = inlined_call_operand.vmem [shape: f32[2,1,8], index: 3, kind: input, shape index: {}]   ;;  %s999_s4 = inlined_call_operand.hbm [shape: f32[2,8,32], index: 4, kind: output, shape index: {}]  }
   0x1   :  { %1003 = sst [smem:[#allocation16_spill]] %s996_s1 }
   0x2   :  { %9 = vsyncpa [#allocation3], 0 }
   0x3   :  { %11 = vsyncpa [#allocation3 + $0x1], 0 }
   0x4   :  { %12 = vsyncpa [#allocation6], 0 }
   0x5   :  { %14 = vsyncpa [#allocation6 + $0x1], 0 }
   0x6   :  { %15 = vsyncpa [#allocation4], 0 }
   0x7   :  { %17 = vsyncpa [#allocation4 + $0x1], 0  ;;  %s829_s15 = smov 0   ;;  %s831_s16 = smov 0  }
   0x8   :  { %s833_s17 = smov 0   ;;  %s835_s18 = smov 0  }
   0x9   :  { %s837_s19 = smov 0   ;;  %s839_s20 = smov 0  }
   0xa LB: > { %1004 = sst [smem:[#allocation12_spill]] %s790_s17  ;;  %s860_s21 = sadd.s32 4294967295, %s802_s20   ;;  %s802_s20 = sphi %s839_s20, %s23_s20   ;;  %s798_s19 = sphi %s837_s19, %s1018_s19   ;;  %s794_s18 = sphi %s835_s18, %s1017_s18   ;;  %s790_s17 = sphi %s833_s17, %s1016_s17   ;;  %s786_s16 = sphi %s831_s16, %s1020_s16   ;;  %s782_s15 = sphi %s829_s15, %s1019_s15  }
   0xb   : > { %1005 = sst [smem:[#allocation13_spill]] %s798_s19  ;;  %s532_s22 = sadd.s32 4294967294, %s802_s20  }
   0xc   : > { %s35_s23 = sadd.s32 1, %s798_s19  ;;  %s44_s24 = sadd.s32 1, %s790_s17 }
   0xd   : > { %p37_p0 = scmp.ge.s32.totalorder %s35_s23, 2  ;;  %p51_p1 = scmp.ne.s32.totalorder %s790_s17, %s786_s16 }
   0xe   : > { %p52_p2 = scmp.eq.s32.totalorder %s802_s20, 0  ;;  %p57_p3 = scmp.ne.s32.totalorder %s786_s16, %s782_s15 }
   0xf   : > { %s1022_s23 = smov (%p37_p0, %s35_s23), 0  ;;  %p58_p5 = scmp.eq.s32.totalorder %s860_s21, 0 }
  0x10   : > { %1006 = sst [smem:[#allocation14_spill]] %s1022_s23  ;;  %p872_p4 = por %p52_p2, %p51_p1 }
  0x11   : > { %s39_s26 = ssub.s32 %s798_s19, %s1022_s23  ;;  %p161_p6 = scmp.eq.s32.totalorder %s860_s21, 1 }
  0x12   : > { %p42_p7 = scmp.eq.s32.totalorder %s39_s26, 0  ;;  %p880_p8 = por %p58_p5, %p57_p3 }
  0x13   : > { %p884_p9 = por %p161_p6, %p51_p1  ;;  %p167_p10 = scmp.eq.s32.totalorder %s532_s22, 1 }
  0x14   : > { %s889_s29 = scalar_select %p42_p7, %s790_s17, %s44_s24  }
  0x15   : > { %p891_p11 = por %p167_p10, %p57_p3  ;;  %p534_p12 = scmp.ge.s32.totalorder %s802_s20, 2 }
  0x16   : > { %1010 = sst [smem:[#allocation15_spill]] %s889_s29  ;;  %p575_p13 = scmp.lt.s32.totalorder %s802_s20, 2 }
  0x17   : > { %s187_s5 = sand.u32 1, %s790_s17   ;;  %s536_s7 = sshll.u32 %s798_s19, 3 }
  0x18   : > { %s535_s6 = sshll.u32 %s187_s5, 3  ;;  %p901_p0 = pnand %p575_p13, %p872_p4 }
  0x19   : > { %s207_s9 = sand.u32 1, %s802_s20   ;;  %s1013_s1 = sld [smem:[#allocation16_spill]] }
  0x1a   : > { %s211_s14 = scalar_lea.vmem [#allocation5], %s535_s6  ;;  %s208_s24 = scalar_lea.sflag [#allocation6], %s207_s9 }
  0x1b   : > { %s219_s22 = sshll.u32 %s211_s14, 4  ;;  %p541_p1 = scmp.ge.s32.totalorder %s802_s20, 1  ;;  %s220_s22 = int_to_ptr.vmem [resolvable:$true] %s219_s22 }
  0x1c   : > { %p249_p2 = scmp.lt.s32.totalorder %s802_s20, 3  ;;  %s196_s10 = scalar_lea.hbm %s995_s0, %s536_s7 }
  0x1d   : > { %s198_s11 = sshll.u32 %s196_s10, 4  ;;  %s188_s14 = scalar_lea.sflag [#allocation3], %s187_s5  ;;  %s199_s11 = int_to_ptr.hbm [resolvable:$true] %s198_s11 }
  0x1e   : > { %p913_p3 = pnand %p541_p1, %p249_p2  ;;  %s230_s29 = scalar_lea.vmem [#allocation7], %s535_s6 }
  0x1f   : > { %s215_s12 = scalar_lea.hbm %s1013_s1, %s536_s7  ;;  %s238_s17 = sshll.u32 %s230_s29, 4  ;;  %s239_s17 = int_to_ptr.vmem [resolvable:$true] %s238_s17 }
  0x20   : > { %s217_s13 = sshll.u32 %s215_s12, 4  ;;  %s191_s12 = scalar_lea.vmem [#allocation2], %s535_s6  ;;  %s218_s13 = int_to_ptr.hbm [resolvable:$true] %s217_s13 }
  0x21   : > { %567 = dma.hbm_to_vmem [thread:$0]  (!%p901_p0), %s218_s13, 128, %s220_s22, %s208_s24  }
  0x22   : > { %s200_s1 = sshll.u32 %s191_s12, 4  ;;  %s234_s22 = scalar_lea.hbm %s997_s2, %s536_s7  ;;  %s201_s1 = int_to_ptr.vmem [resolvable:$true] %s200_s1 }
  0x23   : > { %564 = dma.hbm_to_vmem [thread:$0]  (!%p901_p0), %s199_s11, 128, %s201_s1, %s188_s14  }
  0x24   : > { %s236_s19 = sshll.u32 %s234_s22, 4  ;;  %253 = sbr.rel (%p913_p3) target bundleno = 308 (0x134), region = 36  ;;  %s237_s19 = int_to_ptr.hbm [resolvable:$true] %s236_s19 }
  0x25   : > { %570 = dma.hbm_to_vmem [thread:$0]  (!%p901_p0), %s237_s19, 128, %s239_s17, %s208_s24  }
  0x26   : > { %s930_s23 = sand.u32 (!%p913_p3), 1, %s786_s16  }
  0x27   : > { %s933_s1 = sshll.u32 (!%p913_p3), %s930_s23, 3  ;;  %s256_s5 = scalar_lea.sflag (!%p913_p3), [#allocation3], %s930_s23 }
  0x28   : > { %s259_s7 = scalar_lea.vmem (!%p913_p3), [#allocation2], %s933_s1 }
  0x29   : > { %769 = dma.done.wait (%p880_p8), %s256_s5, 128  }
  0x2a   : > { %771 = vsyncadd (%p880_p8), %s256_s5, 4294967168  ;;  %s265_s17 = sand.u32 1, %s860_s21   ;;  %s269_s29 = scalar_lea.vmem [#allocation5], %s933_s1 }
  0x2b   : > { %s266_s19 = scalar_lea.sflag [#allocation6], %s265_s17 }
  0x2c   : > { %773 = dma.done.wait (%p880_p8), %s266_s19, 256  }
  0x2d   : > { %775 = vsyncadd (%p880_p8), %s266_s19, 4294967040  ;;  %p318_p4 = scmp.lt.s32.totalorder %s794_s18, 1  ;;  %vm323_vm0 = vcmask 261120   ;;  %v322_v0 = vld [vmem:[%s269_s29] sm:$0xff]  ;;  %v321_v1 = vld [vmem:[%s259_s7] sm:$0xff]  ;;  %s279_s21 = scalar_lea.vmem [#allocation7], %s933_s1 }
  0x2e   : > { %546 = vmatpush.xpose.msk.msra.mxu0 %vm323_vm0, %v322_v0  ;;  %v355_v2 = vld [vmem:[%s279_s21] sm:$0xff]  ;;  %vm356_vm1 = vcmask 64512   ;;  %s550_s27 = sshll.u32 %s794_s18, 3  ;;  %s317_s12 = scalar_lea.vmem [#allocation8], %s933_s1 }
  0x2f   : > { %s319_s6 = scalar_select %p318_p4, %s794_s18, 1  ;;  %375 = vmatpush.msra.mxu1 %v355_v2 }
  0x30   : > { %s394_s11 = scalar_lea.hbm %s999_s4, %s550_s27  ;;  %s396_s14 = sshll.u32 %s317_s12, 4  ;;  %s397_s14 = int_to_ptr.vmem [resolvable:$true] %s396_s14 }
  0x31   : > { %s320_s25 = scalar_lea.vmem %s998_s3, %s319_s6  ;;  %547 = vmatmul.msk.f32.vlgmr.msra.gmra.mxu0 %vm323_vm0, %v321_v1  ;;  %s398_s9 = sshll.u32 %s394_s11, 4  ;;  %s399_s9 = int_to_ptr.hbm [resolvable:$true] %s398_s9 }
  0x32   : > { %v625_v3 = vld [vmem:[%s320_s25] ss:$0 sm:$0xff]  ;;  %s383_s13 = scalar_lea.sflag [#allocation4], %s930_s23  ;;  %s730_s22 = sshra.s32 %s399_s9, 4  ;;  %s731_s22 = int_to_ptr.hbm [resolvable:$true] %s730_s22 }
  0x33   : > { %s732_s5 = scalar_lea.hbm %s731_s22, 8  ;;  %s736_s1 = scalar_lea.hbm %s999_s4, 16 }
  0x34   : > { %p733_p5 = scmp.ne.s32.totalorder %s731_s22, %s732_s5  ;;  %p737_p8 = scmp.lt.s32.totalorder %s731_s22, %s999_s4 }
  0x35   : > { %p738_p10 = scmp.lt.s32.totalorder %s736_s1, %s732_s5 }
  0x36   : > { %p734_p6 = pnand %p733_p5, %p884_p9 }
  0x37   : > { %p739_p13 = por %p738_p10, %p737_p8 }
  0x38   : > { %p735_p7 = pneg %p734_p6 }
  0x3a   : > { %p740_p0 = pnand %p739_p13, %p735_p7 }
  0xae   : > { %v347_v4 = vpop.f32.mrf.mxu0 }
  0xaf   : > { %v354_v5 = vmul.f32 %v625_v3, %v347_v4 }
  0xb1   : > { %548 = vmatmul.msk.f32.vlgmr.msra.gmra.mxu1 %vm356_vm1, %v354_v5 }
 0x12e   : > { %v377_v6 = vpop.f32.mrf.mxu1 }
 0x12f   : > { %v380_v7 = vadd.f32 %v377_v6, %v321_v1 }
 0x131   : > { %381 = vst.msk [vmem:[%s317_s12] sm:$0xff] %vm323_vm0, %v380_v7 }
 0x132   : > { %743 = shalt.err (!%p740_p0)
}
 0x133   : > { %559 = dma.vmem_to_hbm [thread:$0]  (%p884_p9), %s397_s14, 128, %s399_s9, %s383_s13  }
 0x134 PF: > { %s410_s23 = sand.u32 1, %s782_s15   ;;  %p572_p1 = pnand %p534_p12, %p891_p11 }
 0x135   : > { %s411_s29 = scalar_lea.sflag [#allocation4], %s410_s23 }
 0x136   : > { %p573_p2 = pneg %p572_p1 }
 0x138   : > { %777 = dma.done.wait (%p573_p2), %s411_s29, 128  }
 0x139   : > { %779 = vsyncadd (%p573_p2), %s411_s29, 4294967168  ;;  %s23_s20 = sadd.s32 1, %s802_s20   ;;  %s1015_s6 = sld [smem:[#allocation12_spill]] }
 0x13a   : > { %p20_p3 = scmp.ge.s32.totalorder %s23_s20, 4   ;;  %s1016_s17 = sld [smem:[#allocation15_spill]] }
 0x13b   : > { %s1017_s18 = sld [smem:[#allocation13_spill]]  ;;  %s1019_s15 = smov %s786_s16 }
 0x13c   : > { %s1018_s19 = sld [smem:[#allocation14_spill]]  ;;  %22 = sbr.rel (!%p20_p3) target bundleno = 10 (0xa), region = 108 }
 0x13f   : > { %s1020_s16 = smov %s1015_s6 }
 0x141   :  { %417 = vsyncpa [#allocation3], 1 }
 0x142   :  { %419 = vsyncpa [#allocation3 + $0x1], 1 }
 0x143   :  { %420 = vsyncpa [#allocation6], 1 }
 0x144   :  { %422 = vsyncpa [#allocation6 + $0x1], 1 }
 0x145   :  { %423 = vsyncpa [#allocation4], 1 }
 0x146   :  { %425 = vsyncpa [#allocation4 + $0x1], 1 }

</bundles_post_ra>
